<compile_context>
chip_gen: v7x
topology: tpu7x:2x2x1
jax: 0.10.0
libtpu: 0.0.40
codegen_flags: <defaults>
</compile_context>

<pallas_src>
import jax
import jax.numpy as jnp
from jax.experimental import pallas as pl
from jax.experimental.pallas import tpu as pltpu


def _round_up(n, m):
    return ((n + m - 1) // m) * m


def _critic_kernel(x_ref, w1_ref, b1_ref, w2_ref, b2_ref, w3_ref, b3_ref, q_ref):
    # x_ref:  [d_in, TILE_B]   (batch along lanes)
    # w1_ref: [fc1, d_in]   b1_ref: [fc1, 1]
    # w2_ref: [fc2, fc1]    b2_ref: [fc2, 1]
    # w3_ref: [1, fc2]      b3_ref: (1, 1) scalar in SMEM
    # q_ref:  [1, TILE_B]   (lane-dense output)

    # fc1: single fused K=d_in contraction, f32 accumulation on the MXU.
    h1 = jnp.dot(w1_ref[...], x_ref[...],
                 preferred_element_type=jnp.float32) + b1_ref[...]
    h1 = jnp.maximum(h1, 0.0)                       # ReLU in f32 (VPU)

    # fc2
    h2 = jnp.dot(w2_ref[...], h1.astype(w2_ref.dtype),
                 preferred_element_type=jnp.float32) + b2_ref[...]
    h2 = jnp.maximum(h2, 0.0)

    # q head (fc2 -> 1): stays on the MXU; result is already a lane-dense
    # (1, TILE_B) row.  b3 is an SMEM scalar folded into the store.
    q = jnp.dot(w3_ref[...], h2.astype(w3_ref.dtype),
                preferred_element_type=jnp.float32)
    q_ref[...] = (q + b3_ref[0, 0]).astype(q_ref.dtype)


def critic_forward(state, action, params, *, tile_b=None, use_bf16=True):
    """state: [B, d_state], action: [B, d_action] -> q: [B, 1] (float32).

    use_bf16=True (default): bf16 MXU operands, f32 accumulation / bias / ReLU
    (safe on v5e/v6e/v7x).  Set use_bf16=False to match the PyTorch f32
    reference to ~1e-4.
    """
    w1, b1, w2, b2, w3, b3 = params
    B = state.shape[0]
    d_in = state.shape[1] + action.shape[1]

    # Pre-pack [d_in, B] (batch along lanes).  This is a single tiny XLA copy
    # (B * d_in elements) and lets the kernel do one K=d_in matmul with fully
    # lane-dense activation DMA/loads.
    x_t = jnp.concatenate([state, action], axis=1).T

    compute_dtype = jnp.bfloat16 if use_bf16 else jnp.float32
    x_t = x_t.astype(compute_dtype)
    w1c = w1.astype(compute_dtype)
    w2c = w2.astype(compute_dtype)
    w3c = w3.astype(compute_dtype)
    # b1/b2/b3 stay f32: bias add + ReLU run in f32 after f32 accumulation.

    # Batch tiling: lane axis => tile_b must be a multiple of 128 whenever the
    # grid has >1 step.  Ensure >=2 steps for B > 128 so the "parallel" axis
    # actually uses both v7x TensorCores; cap at 512 to keep the f32
    # intermediates (h1 = 256 x tile_b) small.
    LANE = 128
    MAX_TILE_B = 512
    if tile_b is None:
        tile_b = min(MAX_TILE_B, _round_up(pl.cdiv(B, 2), LANE))
    else:
        tile_b = _round_up(tile_b, LANE)
    b_pad = _round_up(B, tile_b)      # output rounded up; no input padding
    nt = b_pad // tile_b

    def resident(arr):  # full-extent block, constant index_map -> stays in VMEM
        nd = arr.ndim
        return pl.BlockSpec(arr.shape, lambda i, _n=nd: (0,) * _n)

    out = pl.pallas_call(
        _critic_kernel,
        out_shape=jax.ShapeDtypeStruct((1, b_pad), jnp.float32),
        grid=(nt,),
        in_specs=[
            # Activation tile; last block may overrun B (ragged edge): the
            # garbage columns only produce garbage output columns, sliced off.
            pl.BlockSpec((d_in, tile_b), lambda i: (0, i)),
            resident(w1c), resident(b1),
            resident(w2c), resident(b2),
            resident(w3c),
            pl.BlockSpec(memory_space=pltpu.MemorySpace.SMEM),   # b3 scalar
        ],
        out_specs=pl.BlockSpec((1, tile_b), lambda i: (0, i)),    # lane-dense
        compiler_params=pltpu.CompilerParams(
            dimension_semantics=("parallel",)),
    )(x_t, w1c, b1, w2c, b2, w3c, b3)

    return out.reshape(b_pad, 1)[:B]


def init_params(key, input_dim, n_actions, fc1_dims=256, fc2_dims=128):
    """Parameters in native PyTorch layout (weight: [out, in]); biases stored
    as column vectors so they broadcast along the lane (batch) axis in-kernel.
    Init mimics PyTorch's default uniform(-1/sqrt(fan_in), 1/sqrt(fan_in)).
    """
    d_in = input_dim + n_actions
    ks = jax.random.split(key, 6)

    def u(k, shape, fan_in):
        bound = 1.0 / jnp.sqrt(fan_in)
        return jax.random.uniform(k, shape, jnp.float32, -bound, bound)

    w1 = u(ks[0], (fc1_dims, d_in), d_in)          # fc1.weight
    b1 = u(ks[1], (fc1_dims, 1), d_in)             # fc1.bias (column)
    w2 = u(ks[2], (fc2_dims, fc1_dims), fc1_dims)  # fc2.weight
    b2 = u(ks[3], (fc2_dims, 1), fc1_dims)         # fc2.bias (column)
    w3 = u(ks[4], (1, fc2_dims), fc2_dims)         # q1.weight
    b3 = u(ks[5], (1, 1), fc2_dims)                # q1.bias
    return (w1, b1, w2, b2, w3, b3)


def reference_forward(state, action, params):
    """Pure-JAX reference mirroring the PyTorch forward exactly."""
    w1, b1, w2, b2, w3, b3 = params
    x = jnp.concatenate([state, action], axis=1)
    h1 = jax.nn.relu(x @ w1.T + b1.T)
    h2 = jax.nn.relu(h1 @ w2.T + b2.T)
    return h2 @ w3.T + b3


if __name__ == "__main__":
    # TODO(synk): checkpoint save/load and the AdamW optimizer are host-side
    # bookkeeping with no Pallas equivalent; only forward() is implemented.
    key = jax.random.PRNGKey(0)
    kp, ks, ka, ks2, ka2 = jax.random.split(key, 5)

    batch, input_dim, n_actions = 8, 16, 4
    params = init_params(kp, input_dim, n_actions)
    state = jax.random.normal(ks, (batch, input_dim), jnp.float32)
    action = jax.random.normal(ka, (batch, n_actions), jnp.float32)
    q_ref = reference_forward(state, action, params)

    # f32 path (exact PyTorch semantics).
    q_f32 = jax.block_until_ready(
        critic_forward(state, action, params, use_bf16=False))
    assert q_f32.shape == (batch, 1), q_f32.shape
    assert jnp.allclose(q_f32, q_ref, atol=1e-4, rtol=1e-4), (
        f"f32 mismatch: max abs err {jnp.max(jnp.abs(q_f32 - q_ref))}")

    # Default bf16 MXU path (f32 accumulation), looser tolerance.
    q_bf16 = jax.block_until_ready(critic_forward(state, action, params))
    assert jnp.allclose(q_bf16, q_ref, atol=5e-2, rtol=5e-2), (
        f"bf16 mismatch: max abs err {jnp.max(jnp.abs(q_bf16 - q_ref))}")

    # Ragged batch (exercises the no-pad / overrunning last tile path).
    state2 = jax.random.normal(ks2, (10, input_dim), jnp.float32)
    action2 = jax.random.normal(ka2, (10, n_actions), jnp.float32)
    q2 = jax.block_until_ready(
        critic_forward(state2, action2, params, use_bf16=False))
    q2_ref = reference_forward(state2, action2, params)
    assert q2.shape == (10, 1), q2.shape
    assert jnp.allclose(q2, q2_ref, atol=1e-4, rtol=1e-4), (
        f"ragged mismatch: max abs err {jnp.max(jnp.abs(q2 - q2_ref))}")

    # Multi-tile grid (B=256 -> tile_b=128, nt=2: exercises the megacore split).
    state3 = jax.random.normal(ks, (256, input_dim), jnp.float32)
    action3 = jax.random.normal(ka, (256, n_actions), jnp.float32)
    q3 = jax.block_until_ready(
        critic_forward(state3, action3, params, use_bf16=False))
    q3_ref = reference_forward(state3, action3, params)
    assert q3.shape == (256, 1), q3.shape
    assert jnp.allclose(q3, q3_ref, atol=1e-4, rtol=1e-4), (
        f"multi-tile mismatch: max abs err {jnp.max(jnp.abs(q3 - q3_ref))}")

    print("KERNEL_OK")
</pallas_src>

<mosaic_0001>
module attributes {stable_mosaic.version = 11 : i64} {
  func.func @_critic_kernel(%arg0: i32, %arg1: memref<20x128xf32, #tpu.memory_space<vmem>>, %arg2: memref<256x20xf32, #tpu.memory_space<vmem>>, %arg3: memref<256x1xf32, #tpu.memory_space<vmem>>, %arg4: memref<128x256xf32, #tpu.memory_space<vmem>>, %arg5: memref<128x1xf32, #tpu.memory_space<vmem>>, %arg6: memref<1x128xf32, #tpu.memory_space<vmem>>, %arg7: memref<1x1xf32, #tpu.memory_space<smem>>, %arg8: memref<1x128xf32, #tpu.memory_space<vmem>>) attributes {dimension_semantics = [#tpu.dimension_semantics<parallel>], iteration_bounds = array<i64: 1>, scalar_prefetch = 0 : i64, scratch_operands = 0 : i64, tpu.core_type = #tpu.core_type<tc>, window_params = [{transform_indices = @transform_0, window_bounds = array<i64: 20, 128>}, {pipeline_mode = #tpu.pipeline_mode<synchronous>, transform_indices = @transform_1, window_bounds = array<i64: 256, 20>}, {pipeline_mode = #tpu.pipeline_mode<synchronous>, transform_indices = @transform_2, window_bounds = array<i64: 256, 1>}, {pipeline_mode = #tpu.pipeline_mode<synchronous>, transform_indices = @transform_3, window_bounds = array<i64: 128, 256>}, {pipeline_mode = #tpu.pipeline_mode<synchronous>, transform_indices = @transform_4, window_bounds = array<i64: 128, 1>}, {pipeline_mode = #tpu.pipeline_mode<synchronous>, transform_indices = @transform_5, window_bounds = array<i64: 1, 128>}, {transform_indices = @transform_6, window_bounds = array<i64: 1, 1>}, {transform_indices = @transform_7, window_bounds = array<i64: 1, 128>}]} {
    %c0 = arith.constant 0 : index
    %c0_0 = arith.constant 0 : index
    %0 = vector.load %arg2[%c0, %c0_0] : memref<256x20xf32, #tpu.memory_space<vmem>>, vector<256x20xf32>
    %c0_1 = arith.constant 0 : index
    %c0_2 = arith.constant 0 : index
    %1 = vector.load %arg1[%c0_1, %c0_2] : memref<20x128xf32, #tpu.memory_space<vmem>>, vector<20x128xf32>
    %cst = arith.constant dense<0.000000e+00> : vector<256x128xf32>
    %2 = tpu.matmul %0, %1, %cst {dimension_numbers = #tpu.dot_dimension_numbers<[1], [0], [0], [1], [0, 0, 1, 1], [], []>} : vector<256x20xf32>, vector<20x128xf32>, vector<256x128xf32> -> vector<256x128xf32>
    %c0_3 = arith.constant 0 : index
    %c0_4 = arith.constant 0 : index
    %3 = vector.load %arg3[%c0_3, %c0_4] : memref<256x1xf32, #tpu.memory_space<vmem>>, vector<256x1xf32>
    %4 = vector.broadcast %3 : vector<256x1xf32> to vector<256x128xf32>
    %5 = arith.addf %2, %4 : vector<256x128xf32>
    %cst_5 = arith.constant 0.000000e+00 : f32
    %6 = vector.broadcast %cst_5 : f32 to vector<256x128xf32>
    %7 = arith.maximumf %5, %6 : vector<256x128xf32>
    %c0_6 = arith.constant 0 : index
    %c0_7 = arith.constant 0 : index
    %8 = vector.load %arg4[%c0_6, %c0_7] : memref<128x256xf32, #tpu.memory_space<vmem>>, vector<128x256xf32>
    %cst_8 = arith.constant dense<0.000000e+00> : vector<128x128xf32>
    %9 = tpu.matmul %8, %7, %cst_8 {dimension_numbers = #tpu.dot_dimension_numbers<[1], [0], [0], [1], [0, 0, 1, 1], [], []>} : vector<128x256xf32>, vector<256x128xf32>, vector<128x128xf32> -> vector<128x128xf32>
    %c0_9 = arith.constant 0 : index
    %c0_10 = arith.constant 0 : index
    %10 = vector.load %arg5[%c0_9, %c0_10] : memref<128x1xf32, #tpu.memory_space<vmem>>, vector<128x1xf32>
    %11 = vector.broadcast %10 : vector<128x1xf32> to vector<128x128xf32>
    %12 = arith.addf %9, %11 : vector<128x128xf32>
    %cst_11 = arith.constant 0.000000e+00 : f32
    %13 = vector.broadcast %cst_11 : f32 to vector<128x128xf32>
    %14 = arith.maximumf %12, %13 : vector<128x128xf32>
    %c0_12 = arith.constant 0 : index
    %c0_13 = arith.constant 0 : index
    %15 = vector.load %arg6[%c0_12, %c0_13] : memref<1x128xf32, #tpu.memory_space<vmem>>, vector<1x128xf32>
    %cst_14 = arith.constant dense<0.000000e+00> : vector<1x128xf32>
    %16 = tpu.matmul %15, %14, %cst_14 {dimension_numbers = #tpu.dot_dimension_numbers<[1], [0], [0], [1], [0, 0, 1, 1], [], []>} : vector<1x128xf32>, vector<128x128xf32>, vector<1x128xf32> -> vector<1x128xf32>
    %c0_15 = arith.constant 0 : index
    %c0_16 = arith.constant 0 : index
    %17 = memref.load %arg7[%c0_15, %c0_16] : memref<1x1xf32, #tpu.memory_space<smem>>
    %18 = vector.broadcast %17 : f32 to vector<1x128xf32>
    %19 = arith.addf %16, %18 : vector<1x128xf32>
    %c0_17 = arith.constant 0 : index
    %c0_18 = arith.constant 0 : index
    %20 = vector.load %arg8[%c0_17, %c0_18] : memref<1x128xf32, #tpu.memory_space<vmem>>, vector<1x128xf32>
    tpu.vector_store %arg8[%c0_17, %c0_18], %19 {strides = array<i32>} : memref<1x128xf32, #tpu.memory_space<vmem>>, vector<1x128xf32>,
    return
  }
  func.func @transform_0(%arg0: i32) -> (i32, i32) {
    %c0_i32 = arith.constant 0 : i32
    %c0_i32_0 = arith.constant 0 : i32
    return %c0_i32, %arg0 : i32, i32
  }
  func.func @transform_1(%arg0: i32) -> (i32, i32) {
    %c0_i32 = arith.constant 0 : i32
    %c0_i32_0 = arith.constant 0 : i32
    %c0_i32_1 = arith.constant 0 : i32
    return %c0_i32, %c0_i32_0 : i32, i32
  }
  func.func @transform_2(%arg0: i32) -> (i32, i32) {
    %c0_i32 = arith.constant 0 : i32
    %c0_i32_0 = arith.constant 0 : i32
    %c0_i32_1 = arith.constant 0 : i32
    return %c0_i32, %c0_i32_0 : i32, i32
  }
  func.func @transform_3(%arg0: i32) -> (i32, i32) {
    %c0_i32 = arith.constant 0 : i32
    %c0_i32_0 = arith.constant 0 : i32
    %c0_i32_1 = arith.constant 0 : i32
    return %c0_i32, %c0_i32_0 : i32, i32
  }
  func.func @transform_4(%arg0: i32) -> (i32, i32) {
    %c0_i32 = arith.constant 0 : i32
    %c0_i32_0 = arith.constant 0 : i32
    %c0_i32_1 = arith.constant 0 : i32
    return %c0_i32, %c0_i32_0 : i32, i32
  }
  func.func @transform_5(%arg0: i32) -> (i32, i32) {
    %c0_i32 = arith.constant 0 : i32
    %c0_i32_0 = arith.constant 0 : i32
    %c0_i32_1 = arith.constant 0 : i32
    return %c0_i32, %c0_i32_0 : i32, i32
  }
  func.func @transform_6(%arg0: i32) -> (i32, i32) {
    %c0_i32 = arith.constant 0 : i32
    %c0_i32_0 = arith.constant 0 : i32
    %c0_i32_1 = arith.constant 0 : i32
    return %c0_i32, %c0_i32_0 : i32, i32
  }
  func.func @transform_7(%arg0: i32) -> (i32, i32) {
    %c0_i32 = arith.constant 0 : i32
    %c0_i32_0 = arith.constant 0 : i32
    return %c0_i32, %arg0 : i32, i32
  }
}

</mosaic_0001>

<bundles_post_ra>
// kernel: tpu_custom_call.1
= control target key start
LH: loop header
LB: loop body
LE: loop exit
PB: predicated region body
PF: predicated region fallthrough
CT: control target
= control target key end

     0   :  { %vm255_vm0 = vcmask 162816   ;;  %v1335_v3 = vmov 0   ;;  %vm352_vm1 = vcmask 1043456   ;;  %s1855_s0 = inlined_call_operand.vmem [shape: f32[20,8], index: 0, kind: input, shape index: {}]   ;;  %s1856_s1 = inlined_call_operand.vmem [shape: f32[256,20], index: 1, kind: input, shape index: {}]   ;;  %s1857_s2 = inlined_call_operand.vmem [shape: f32[256,1], index: 2, kind: input, shape index: {}]   ;;  %s1858_s3 = inlined_call_operand.vmem [shape: f32[128,256], index: 3, kind: input, shape index: {}]   ;;  %s1859_s4 = inlined_call_operand.vmem [shape: f32[128,1], index: 4, kind: input, shape index: {}]   ;;  %s1860_s5 = inlined_call_operand.vmem [shape: f32[1,128], index: 5, kind: input, shape index: {}]   ;;  %s1861_s6 = inlined_call_operand.<no memory space> [shape: f32[1,1], index: 6, kind: input, shape index: {}]   ;;  %s1862_s7 = inlined_call_operand.hbm [shape: f32[1,128], index: 7, kind: output, shape index: {}]  }
   0x1   :  { %v79_v0 = vld [vmem:[%s1857_s2 + $0x80] sm:$0xff]  ;;  %1310 = vset.pattern.permute.xlu1 %v1335_v3  ;;  %1309 = vset.pattern.permute.xlu0 %v1335_v3  ;;  %v61_v4 = vld [vmem:[%s1855_s0 + $0x8] sm:$0xff]  ;;  %v62_v9 = vld [vmem:[%s1855_s0 + $0x10] sm:$0xf] }
   0x2   :  { %v63_v1 = vld [vmem:[%s1857_s2] sm:$0xff]  ;;  %177 = vperm.xlu0 %1309, %v79_v0   ;;  %v80_v7 = vld [vmem:[%s1857_s2 + $0x88] sm:$0xff]  ;;  %v81_v11 = vld [vmem:[%s1857_s2 + $0x90] sm:$0xff] }
   0x3   :  { %v60_v2 = vld [vmem:[%s1855_s0] sm:$0xff]  ;;  %97 = vperm.xlu1 %1310, %v63_v1   ;;  %v64_v8 = vld [vmem:[%s1857_s2 + $0x8] sm:$0xff]  ;;  %v82_v12 = vld [vmem:[%s1857_s2 + $0x98] sm:$0xff] }
   0x4   :  { %v1244_v5 = vpack.c.bf16 %v61_v4, %v60_v2  ;;  %v28_v6 = vld [vmem:[%s1856_s1] sm:$0xff]  ;;  %v29_v10 = vld [vmem:[%s1856_s1 + $0x8] sm:$0xff]  ;;  %v30_v13 = vld [vmem:[%s1856_s1 + $0x10] sm:$0xff] }
   0x5   :  { %1161 = vmatprep.mubr.msk.f32.mxu0 %vm255_vm0, %v28_v6  ;;  %v31_v14 = vld [vmem:[%s1856_s1 + $0x18] sm:$0xff]  ;;  %v65_v15 = vld [vmem:[%s1857_s2 + $0x10] sm:$0xff]  ;;  %v32_v17 = vld [vmem:[%s1856_s1 + $0x20] sm:$0xff] }
   0x6   :  { %1245 = vmatprep.subr.bf16.mxu0 %v1244_v5  ;;  %182 = vperm.xlu0 %1309, %v80_v7   ;;  %v66_v16 = vld [vmem:[%s1857_s2 + $0x18] sm:$0xff]  ;;  %v33_v18 = vld [vmem:[%s1856_s1 + $0x28] sm:$0xff]  ;;  %v83_v19 = vld [vmem:[%s1857_s2 + $0xa0] sm:$0xff] }
   0x7   :  { %1247 = vmatpush3.bf16.msra.mxu0 %v1244_v5  ;;  %102 = vperm.xlu1 %1310, %v64_v8   ;;  %v84_v20 = vld [vmem:[%s1857_s2 + $0xa8] sm:$0xff]  ;;  %v34_v21 = vld [vmem:[%s1856_s1 + $0x30] sm:$0xff]  ;;  %v35_v22 = vld [vmem:[%s1856_s1 + $0x38] sm:$0xff] }
   0x8   :  { %1159 = vmatprep.subr.msk.mxu0 %vm352_vm1, %v62_v9  ;;  %v67_v23 = vld [vmem:[%s1857_s2 + $0x20] sm:$0xff]  ;;  %v68_v24 = vld [vmem:[%s1857_s2 + $0x28] sm:$0xff]  ;;  %v85_v27 = vld [vmem:[%s1857_s2 + $0xb0] sm:$0xff] }
   0x9   :  { %v36_v25 = vld [vmem:[%s1856_s1 + $0x40] sm:$0xff]  ;;  %v37_v26 = vld [vmem:[%s1856_s1 + $0x48] sm:$0xff]  ;;  %v86_v28 = vld [vmem:[%s1857_s2 + $0xb8] sm:$0xff] }
   0xa   :  { %187 = vperm.xlu0 %1309, %v81_v11   ;;  %v38_v29 = vld [vmem:[%s1856_s1 + $0x50] sm:$0xff]  ;;  %v39_v30 = vld [vmem:[%s1856_s1 + $0x58] sm:$0xff] }
   0xb   :  { %1160 = vmatpush3.msk.msra.mxu0 %vm352_vm1, %v62_v9  ;;  %192 = vperm.xlu1 %1310, %v82_v12   ;;  %v69_v31 = vld [vmem:[%s1857_s2 + $0x30] sm:$0xff] }
   0xc   :  { %1162 = vmatmul.mubr.msk.f32.vlgmr.msra.gmra.mrb[0].mxu0 %vm255_vm0, %v29_v10 }
   0xd   :  { %1164 = vmatprep.mubr.msk.f32.mxu0 %vm255_vm0, %v30_v13 }
   0xe   :  { %107 = vperm.xlu0 %1309, %v65_v15  }
   0xf   :  { %112 = vperm.xlu1 %1310, %v66_v16  }
  0x10   :  { %1165 = vmatmul.mubr.msk.f32.gmra.mrb[2].mxu0 %vm255_vm0, %v31_v14 }
  0x11   :  { %1167 = vmatprep.mubr.msk.f32.mxu0 %vm255_vm0, %v32_v17 }
  0x12   :  { %197 = vperm.xlu0 %1309, %v83_v19  }
  0x13   :  { %202 = vperm.xlu1 %1310, %v84_v20  }
  0x14   :  { %1168 = vmatmul.mubr.msk.f32.gmra.mrb[4].mxu0 %vm255_vm0, %v33_v18 }
  0x15   :  { %1170 = vmatprep.mubr.msk.f32.mxu0 %vm255_vm0, %v34_v21 }
  0x16   :  { %117 = vperm.xlu0 %1309, %v67_v23  }
  0x17   :  { %122 = vperm.xlu1 %1310, %v68_v24  }
  0x18   :  { %1171 = vmatmul.mubr.msk.f32.gmra.mrb[6].mxu0 %vm255_vm0, %v35_v22 }
  0x19   :  { %1173 = vmatprep.mubr.msk.f32.mxu0 %vm255_vm0, %v36_v25 }
  0x1a   :  { %207 = vperm.xlu0 %1309, %v85_v27  }
  0x1b   :  { %212 = vperm.xlu1 %1310, %v86_v28  }
  0x1c   :  { %1174 = vmatmul.mubr.msk.f32.gmra.mrb[8].mxu0 %vm255_vm0, %v37_v26 }
  0x1d   :  { %1176 = vmatprep.mubr.msk.f32.mxu0 %vm255_vm0, %v38_v29 }
  0x1e   :  { %13 = vsyncpa [#allocation4], 0  ;;  %v70_v32 = vld [vmem:[%s1857_s2 + $0x38] sm:$0xff]  ;;  %v40_v33 = vld [vmem:[%s1856_s1 + $0x60] sm:$0xff]  ;;  %127 = vperm.xlu0 %1309, %v69_v31   ;;  %vm1337_vm2 = vmmov 0   ;;  %s1339_s30 = smov [#allocation3]  }
  0x1f   :  { %132 = vperm.xlu1 %1310, %v70_v32   ;;  %v41_v34 = vld [vmem:[%s1856_s1 + $0x68] sm:$0xff]  ;;  %v87_v35 = vld [vmem:[%s1857_s2 + $0xc0] sm:$0xff]  ;;  %v42_v37 = vld [vmem:[%s1856_s1 + $0x70] sm:$0xff]  ;;  %s982_s8 = sshll.u32 %s1339_s30, 4  ;;  %s983_s8 = int_to_ptr.vmem [resolvable:$true] %s982_s8 }
  0x20   :  { %1177 = vmatmul.mubr.msk.f32.gmra.mrb[10].mxu0 %vm255_vm0, %v39_v30  ;;  %v88_v36 = vld [vmem:[%s1857_s2 + $0xc8] sm:$0xff]  ;;  %v43_v38 = vld [vmem:[%s1856_s1 + $0x78] sm:$0xff]  ;;  %v71_v39 = vld [vmem:[%s1857_s2 + $0x40] sm:$0xff]  ;;  %s1311_s9 = scalar_lea.vmem %s983_s8, 16  ;;  %s1315_s10 = scalar_lea.vmem %s983_s8, 32 }
  0x21   :  { %1179 = vmatprep.mubr.msk.f32.mxu0 %vm255_vm0, %v40_v33  ;;  %v72_v40 = vld [vmem:[%s1857_s2 + $0x48] sm:$0xff]  ;;  %v44_v41 = vld [vmem:[%s1856_s1 + $0x80] sm:$0xff]  ;;  %v89_v43 = vld [vmem:[%s1857_s2 + $0xd0] sm:$0xff]  ;;  %p1312_p0 = scmp.ne.s32.totalorder %s983_s8, %s1311_s9  ;;  %p1316_p1 = scmp.lt.s32.totalorder %s983_s8, %s983_s8 }
  0x22   :  { %217 = vperm.xlu0 %1309, %v87_v35   ;;  %v45_v42 = vld [vmem:[%s1856_s1 + $0x88] sm:$0xff]  ;;  %v90_v44 = vld [vmem:[%s1857_s2 + $0xd8] sm:$0xff]  ;;  %v46_v45 = vld [vmem:[%s1856_s1 + $0x90] sm:$0xff]  ;;  %p1317_p2 = scmp.lt.s32.totalorder %s1315_s10, %s1311_s9 }
  0x23   :  { %222 = vperm.xlu1 %1310, %v88_v36   ;;  %v47_v46 = vld [vmem:[%s1856_s1 + $0x98] sm:$0xff]  ;;  %v73_v47 = vld [vmem:[%s1857_s2 + $0x50] sm:$0xff]  ;;  %v48_v49 = vld [vmem:[%s1856_s1 + $0xa0] sm:$0xff] }
  0x24   :  { %1180 = vmatmul.mubr.msk.f32.gmra.mrb[12].mxu0 %vm255_vm0, %v41_v34  ;;  %v74_v48 = vld [vmem:[%s1857_s2 + $0x58] sm:$0xff]  ;;  %v49_v50 = vld [vmem:[%s1856_s1 + $0xa8] sm:$0xff]  ;;  %v91_v51 = vld [vmem:[%s1857_s2 + $0xe0] sm:$0xff]  ;;  %p1318_p3 = por %p1317_p2, %p1316_p1 }
  0x25   :  { %1182 = vmatprep.mubr.msk.f32.mxu0 %vm255_vm0, %v42_v37  ;;  %v92_v52 = vld [vmem:[%s1857_s2 + $0xe8] sm:$0xff]  ;;  %v50_v53 = vld [vmem:[%s1856_s1 + $0xb0] sm:$0xff]  ;;  %v51_v54 = vld [vmem:[%s1856_s1 + $0xb8] sm:$0xff] }
  0x26   :  { %137 = vperm.xlu0 %1309, %v71_v39   ;;  %v75_v55 = vld [vmem:[%s1857_s2 + $0x60] sm:$0xff]  ;;  %v76_v56 = vld [vmem:[%s1857_s2 + $0x68] sm:$0xff]  ;;  %v93_v59 = vld [vmem:[%s1857_s2 + $0xf0] sm:$0xff]  ;;  %p1319_p4 = pnand %p1318_p3, %p1312_p0 }
  0x27   :  { %142 = vperm.xlu1 %1310, %v72_v40   ;;  %v52_v57 = vld [vmem:[%s1856_s1 + $0xc0] sm:$0xff]  ;;  %v53_v58 = vld [vmem:[%s1856_s1 + $0xc8] sm:$0xff]  ;;  %v94_v60 = vld [vmem:[%s1857_s2 + $0xf8] sm:$0xff] }
  0x28   :  { %1183 = vmatmul.mubr.msk.f32.gmra.mrb[14].mxu0 %vm255_vm0, %v43_v38  ;;  %v54_v61 = vld [vmem:[%s1856_s1 + $0xd0] sm:$0xff]  ;;  %v55_v62 = vld [vmem:[%s1856_s1 + $0xd8] sm:$0xff]  ;;  %v56_v1 = vld [vmem:[%s1856_s1 + $0xe0] sm:$0xff] }
  0x29   :  { %1185 = vmatprep.mubr.msk.f32.mxu0 %vm255_vm0, %v44_v41  ;;  %v77_v63 = vld [vmem:[%s1857_s2 + $0x70] sm:$0xff]  ;;  %v78_v0 = vld [vmem:[%s1857_s2 + $0x78] sm:$0xff]  ;;  %v57_v2 = vld [vmem:[%s1856_s1 + $0xe8] sm:$0xff] }
  0x2a   :  { %227 = vperm.xlu0 %1309, %v89_v43   ;;  %v645_v3 = vld [vmem:[%s1859_s4] sm:$0xff]  ;;  %v646_v4 = vld [vmem:[%s1859_s4 + $0x8] sm:$0xff]  ;;  %v58_v5 = vld [vmem:[%s1856_s1 + $0xf0] sm:$0xff] }
  0x2b   :  { %232 = vperm.xlu1 %1310, %v90_v44   ;;  %v59_v6 = vld [vmem:[%s1856_s1 + $0xf8] sm:$0xff]  ;;  %v647_v7 = vld [vmem:[%s1859_s4 + $0x10] sm:$0xff]  ;;  %v649_v9 = vld [vmem:[%s1859_s4 + $0x20] sm:$0xff] }
  0x2c   :  { %1186 = vmatmul.mubr.msk.f32.gmra.mrb[16].mxu0 %vm255_vm0, %v45_v42  ;;  %v648_v8 = vld [vmem:[%s1859_s4 + $0x18] sm:$0xff]  ;;  %v650_v10 = vld [vmem:[%s1859_s4 + $0x28] sm:$0xff]  ;;  %v651_v11 = vld [vmem:[%s1859_s4 + $0x30] sm:$0xff] }
  0x2d   :  { %1188 = vmatprep.mubr.msk.f32.mxu0 %vm255_vm0, %v46_v45  ;;  %v652_v12 = vld [vmem:[%s1859_s4 + $0x38] sm:$0xff]  ;;  %v653_v13 = vld [vmem:[%s1859_s4 + $0x40] sm:$0xff]  ;;  %v654_v14 = vld [vmem:[%s1859_s4 + $0x48] sm:$0xff] }
  0x2e   :  { %147 = vperm.xlu0 %1309, %v73_v47   ;;  %v655_v15 = vld [vmem:[%s1859_s4 + $0x50] sm:$0xff]  ;;  %v656_v16 = vld [vmem:[%s1859_s4 + $0x58] sm:$0xff]  ;;  %v657_v17 = vld [vmem:[%s1859_s4 + $0x60] sm:$0xff] }
  0x2f   :  { %152 = vperm.xlu1 %1310, %v74_v48   ;;  %v658_v18 = vld [vmem:[%s1859_s4 + $0x68] sm:$0xff]  ;;  %v659_v19 = vld [vmem:[%s1859_s4 + $0x70] sm:$0xff]  ;;  %v660_v20 = vld [vmem:[%s1859_s4 + $0x78] sm:$0xff] }
  0x30   :  { %1189 = vmatmul.mubr.msk.f32.gmra.mrb[18].mxu0 %vm255_vm0, %v47_v46  ;;  %v614_v23 = vld [vmem:[%s1858_s3 + $0x8] sm:$0xff] }
  0x31   :  { %1191 = vmatprep.mubr.msk.f32.mxu0 %vm255_vm0, %v48_v49  ;;  %805 = vmatprep.mubr.f32.mxu1 %v614_v23 }
  0x32   :  { %237 = vperm.xlu0 %1309, %v91_v51  }
  0x33   :  { %242 = vperm.xlu1 %1310, %v92_v52  }
  0x34   :  { %1192 = vmatmul.mubr.msk.f32.gmra.mrb[20].mxu0 %vm255_vm0, %v49_v50 }
  0x35   :  { %1194 = vmatprep.mubr.msk.f32.mxu0 %vm255_vm0, %v50_v53 }
  0x36   :  { %157 = vperm.xlu0 %1309, %v75_v55  }
  0x37   :  { %162 = vperm.xlu1 %1310, %v76_v56  }
  0x38   :  { %1195 = vmatmul.mubr.msk.f32.gmra.mrb[22].mxu0 %vm255_vm0, %v51_v54 }
  0x39   :  { %1197 = vmatprep.mubr.msk.f32.mxu0 %vm255_vm0, %v52_v57 }
  0x3a   :  { %247 = vperm.xlu0 %1309, %v93_v59  }
  0x3b   :  { %252 = vperm.xlu1 %1310, %v94_v60  }
  0x3c   :  { %1198 = vmatmul.mubr.msk.f32.gmra.mrb[24].mxu0 %vm255_vm0, %v53_v58 }
  0x3d   :  { %1200 = vmatprep.mubr.msk.f32.mxu0 %vm255_vm0, %v54_v61 }
  0x3e   :  { %167 = vperm.xlu0 %1309, %v77_v63  }
  0x3f   :  { %172 = vperm.xlu1 %1310, %v78_v0  }
  0x40   :  { %1201 = vmatmul.mubr.msk.f32.gmra.mrb[26].mxu0 %vm255_vm0, %v55_v62 }
  0x41   :  { %1203 = vmatprep.mubr.msk.f32.mxu0 %vm255_vm0, %v56_v1 }
  0x42   :  { %663 = vperm.xlu0 %1309, %v645_v3  }
  0x43   :  { %668 = vperm.xlu1 %1310, %v646_v4  }
  0x44   :  { %1204 = vmatmul.mubr.msk.f32.gmra.mrb[28].mxu0 %vm255_vm0, %v57_v2 }
  0x45   :  { %1206 = vmatprep.mubr.msk.f32.mxu0 %vm255_vm0, %v58_v5 }
  0x46   :  { %673 = vperm.xlu0 %1309, %v647_v7  }
  0x47   :  { %678 = vperm.xlu1 %1310, %v648_v8  }
  0x48   :  { %1207 = vmatmul.mubr.msk.f32.gmra.mrb[30].mxu0 %vm255_vm0, %v59_v6 }
  0x4a   :  { %683 = vperm.xlu0 %1309, %v649_v9  }
  0x4b   :  { %688 = vperm.xlu1 %1310, %v650_v10  }
  0x4e   :  { %693 = vperm.xlu0 %1309, %v651_v11  }
  0x4f   :  { %698 = vperm.xlu1 %1310, %v652_v12  }
  0x52   :  { %703 = vperm.xlu0 %1309, %v653_v13  }
  0x53   :  { %708 = vperm.xlu1 %1310, %v654_v14  }
  0x56   :  { %713 = vperm.xlu0 %1309, %v655_v15  }
  0x57   :  { %718 = vperm.xlu1 %1310, %v656_v16  }
  0x5a   :  { %723 = vperm.xlu0 %1309, %v657_v17  }
  0x5b   :  { %728 = vperm.xlu1 %1310, %v658_v18  }
  0x5e   :  { %733 = vperm.xlu0 %1309, %v659_v19  }
  0x5f   :  { %738 = vperm.xlu1 %1310, %v660_v20  }
  0x81   :  { %v1661_v22 = vpop.permute.xlu0 %177 }
  0x82   :  { %v98_v21 = vpop.permute.xlu1 %97 }
  0x85   :  { %v1666_v25 = vpop.permute.xlu0 %182 }
  0x86   :  { %v103_v24 = vpop.permute.xlu1 %102 }
  0x89   :  { %v1670_v27 = vpop.permute.xlu0 %187 }
  0x8a   :  { %v1668_v26 = vpop.permute.xlu1 %192 }
  0x8d   :  { %v108_v29 = vpop.permute.xlu0 %107 }
  0x8e   :  { %v113_v28 = vpop.permute.xlu1 %112 }
  0x91   :  { %v1674_v31 = vpop.permute.xlu0 %197 }
  0x92   :  { %v1672_v30 = vpop.permute.xlu1 %202 }
  0x95   :  { %v118_v33 = vpop.permute.xlu0 %117 }
  0x96   :  { %v123_v32 = vpop.permute.xlu1 %122 }
  0x99   :  { %v1678_v35 = vpop.permute.xlu0 %207 }
  0x9a   :  { %v1676_v34 = vpop.permute.xlu1 %212 }
  0x9d   :  { %v128_v37 = vpop.permute.xlu0 %127 }
  0x9e   :  { %v133_v36 = vpop.permute.xlu1 %132 }
  0xa1   :  { %v1682_v39 = vpop.permute.xlu0 %217 }
  0xa2   :  { %v1680_v38 = vpop.permute.xlu1 %222 }
  0xa5   :  { %v138_v41 = vpop.permute.xlu0 %137 }
  0xa6   :  { %v143_v40 = vpop.permute.xlu1 %142 }
  0xa9   :  { %v1686_v43 = vpop.permute.xlu0 %227 }
  0xaa   :  { %v1684_v42 = vpop.permute.xlu1 %232 }
  0xad   :  { %v148_v52 = vpop.permute.xlu0 %147 }
  0xae   :  { %v153_v49 = vpop.permute.xlu1 %152 }
  0xb1   :  { %v1694_v1 = vpop.permute.xlu0 %237 }
  0xb2   :  { %v1690_v62 = vpop.permute.xlu1 %242 }
  0xb5   :  { %v158_v13 = vpop.permute.xlu0 %157 }
  0xb6   :  { %v163_v10 = vpop.permute.xlu1 %162 }
  0xdf   :  { %v1163_v44 = vpop.f32.mrb[0].mxu0 }
  0xe0   :  { %v428_v45 = vadd.f32 %v1163_v44, %v103_v24  ;;  %v422_v46 = vpop.f32.mrb[1].mxu0  ;;  %v1700_v24 = vpop.permute.xlu1 %252 }
  0xe1   :  { %v423_v47 = vadd.f32 %v422_v46, %v98_v21 }
  0xe2   :  { %v582_v48 = vmax.f32 %v428_v45, 0.0 }
  0xe3   :  { %v581_v50 = vmax.f32 %v423_v47, 0.0  ;;  %v1166_v51 = vpop.f32.mrb[2].mxu0 }
  0xe4   :  { %v438_v53 = vadd.f32 %v1166_v51, %v113_v28  ;;  %v432_v54 = vpop.f32.mrb[3].mxu0  ;;  %v173_v47 = vpop.permute.xlu1 %172 }
  0xe5   :  { %v433_v55 = vadd.f32 %v432_v54, %v108_v29  ;;  %v1688_v56 = vpack.c.bf16 %v582_v48, %v581_v50 }
  0xe6   :  { %v584_v57 = vmax.f32 %v438_v53, 0.0 }
  0xe7   :  { %v583_v58 = vmax.f32 %v433_v55, 0.0  ;;  %v1169_v59 = vpop.f32.mrb[4].mxu0 }
  0xe8   :  { %v448_v60 = vadd.f32 %v1169_v59, %v123_v32  ;;  %v442_v61 = vpop.f32.mrb[5].mxu0  ;;  %v1704_v32 = vpop.permute.xlu0 %247 }
  0xe9   :  { %v1692_v63 = vpack.c.bf16 %v584_v57, %v583_v58  ;;  %v443_v0 = vadd.f32 %v442_v61, %v118_v33 }
  0xea   :  { %v586_v2 = vmax.f32 %v448_v60, 0.0 }
  0xeb   :  { %v585_v3 = vmax.f32 %v443_v0, 0.0  ;;  %v1172_v4 = vpop.f32.mrb[6].mxu0 }
  0xec   :  { %v458_v5 = vadd.f32 %v1172_v4, %v133_v36  ;;  %v452_v6 = vpop.f32.mrb[7].mxu0  ;;  %v168_v50 = vpop.permute.xlu0 %167 }
  0xed   :  { %v1696_v7 = vpack.c.bf16 %v586_v2, %v585_v3  ;;  %v453_v8 = vadd.f32 %v452_v6, %v128_v37 }
  0xee   :  { %v588_v9 = vmax.f32 %v458_v5, 0.0 }
  0xef   :  { %v587_v11 = vmax.f32 %v453_v8, 0.0  ;;  %v1175_v12 = vpop.f32.mrb[8].mxu0 }
  0xf0   :  { %v468_v14 = vadd.f32 %v1175_v12, %v143_v40  ;;  %v462_v15 = vpop.f32.mrb[9].mxu0 }
  0xf1   :  { %v1698_v16 = vpack.c.bf16 %v588_v9, %v587_v11  ;;  %v463_v17 = vadd.f32 %v462_v15, %v138_v41 }
  0xf2   :  { %v590_v18 = vmax.f32 %v468_v14, 0.0 }
  0xf3   :  { %v589_v19 = vmax.f32 %v463_v17, 0.0  ;;  %v1178_v20 = vpop.f32.mrb[10].mxu0 }
  0xf4   :  { %v478_v21 = vadd.f32 %v1178_v20, %v153_v49  ;;  %v472_v23 = vpop.f32.mrb[11].mxu0 }
  0xf5   :  { %v1702_v28 = vpack.c.bf16 %v590_v18, %v589_v19  ;;  %v473_v29 = vadd.f32 %v472_v23, %v148_v52 }
  0xf6   :  { %v592_v33 = vmax.f32 %v478_v21, 0.0 }
  0xf7   :  { %v591_v36 = vmax.f32 %v473_v29, 0.0  ;;  %v1181_v37 = vpop.f32.mrb[12].mxu0 }
  0xf8   :  { %v488_v40 = vadd.f32 %v1181_v37, %v163_v10  ;;  %v482_v44 = vpop.f32.mrb[13].mxu0 }
  0xf9   :  { %v1706_v45 = vpack.c.bf16 %v592_v33, %v591_v36  ;;  %v483_v41 = vadd.f32 %v482_v44, %v158_v13 }
  0xfa   :  { %v594_v46 = vmax.f32 %v488_v40, 0.0 }
  0xfb   :  { %v593_v48 = vmax.f32 %v483_v41, 0.0  ;;  %v1184_v49 = vpop.f32.mrb[14].mxu0 }
  0xfc   :  { %v498_v51 = vadd.f32 %v1184_v49, %v173_v47  ;;  %v492_v53 = vpop.f32.mrb[15].mxu0 }
  0xfd   :  { %v1708_v54 = vpack.c.bf16 %v594_v46, %v593_v48  ;;  %v493_v52 = vadd.f32 %v492_v53, %v168_v50 }
  0xfe   :  { %v596_v55 = vmax.f32 %v498_v51, 0.0 }
  0xff   :  { %v595_v57 = vmax.f32 %v493_v52, 0.0  ;;  %v1187_v58 = vpop.f32.mrb[16].mxu0 }
 0x100   :  { %v508_v59 = vadd.f32 %v1187_v58, %v1666_v25  ;;  %v502_v60 = vpop.f32.mrb[17].mxu0  ;;  %v622_v58 = vld [vmem:[%s1858_s3 + $0x48] sm:$0xff] }
 0x101   :  { %v1711_v61 = vpack.c.bf16 %v596_v55, %v595_v57  ;;  %v503_v0 = vadd.f32 %v502_v60, %v1661_v22  ;;  %v620_v55 = vld [vmem:[%s1858_s3 + $0x38] sm:$0xff]  ;;  %v619_v57 = vld [vmem:[%s1858_s3 + $0x30] sm:$0xff] }
 0x102   :  { %v598_v2 = vmax.f32 %v508_v59, 0.0  ;;  %v621_v59 = vld [vmem:[%s1858_s3 + $0x40] sm:$0xff]  ;;  %v624_v60 = vld [vmem:[%s1858_s3 + $0x58] sm:$0xff] }
 0x103   :  { %v597_v3 = vmax.f32 %v503_v0, 0.0  ;;  %v1190_v4 = vpop.f32.mrb[18].mxu0  ;;  %v626_v0 = vld [vmem:[%s1858_s3 + $0x68] sm:$0xff] }
 0x104   :  { %v518_v5 = vadd.f32 %v1190_v4, %v1668_v26  ;;  %v512_v6 = vpop.f32.mrb[19].mxu0  ;;  %v627_v4 = vld [vmem:[%s1858_s3 + $0x70] sm:$0xff] }
 0x105   :  { %v513_v8 = vadd.f32 %v512_v6, %v1670_v27  ;;  %v1248_v9 = vpack.c.bf16 %v598_v2, %v597_v3  ;;  %v625_v2 = vld [vmem:[%s1858_s3 + $0x60] sm:$0xff]  ;;  %v628_v3 = vld [vmem:[%s1858_s3 + $0x78] sm:$0xff] }
 0x106   :  { %v600_v10 = vmax.f32 %v518_v5, 0.0  ;;  %v630_v5 = vld [vmem:[%s1858_s3 + $0x88] sm:$0xff]  ;;  %v629_v6 = vld [vmem:[%s1858_s3 + $0x80] sm:$0xff] }
 0x107   :  { %v599_v11 = vmax.f32 %v513_v8, 0.0  ;;  %v1193_v12 = vpop.f32.mrb[20].mxu0  ;;  %1249 = vmatprep.subr.bf16.mxu1 %v1248_v9  ;;  %v632_v8 = vld [vmem:[%s1858_s3 + $0x98] sm:$0xff]  ;;  %v631_v9 = vld [vmem:[%s1858_s3 + $0x90] sm:$0xff] }
 0x108   :  { %v528_v25 = vadd.f32 %v1193_v12, %v1672_v30  ;;  %v522_v13 = vpop.f32.mrb[21].mxu0  ;;  %1251 = vmatpush3.bf16.msra.mxu1 %v1688_v56  ;;  %v636_v12 = vld [vmem:[%s1858_s3 + $0xb8] sm:$0xff] }
 0x109   :  { %v1252_v14 = vpack.c.bf16 %v600_v10, %v599_v11  ;;  %v523_v22 = vadd.f32 %v522_v13, %v1674_v31  ;;  %v634_v10 = vld [vmem:[%s1858_s3 + $0xa8] sm:$0xff]  ;;  %v633_v11 = vld [vmem:[%s1858_s3 + $0xa0] sm:$0xff] }
 0x10a   :  { %v602_v15 = vmax.f32 %v528_v25, 0.0  ;;  %v635_v25 = vld [vmem:[%s1858_s3 + $0xb0] sm:$0xff]  ;;  %v638_v13 = vld [vmem:[%s1858_s3 + $0xc8] sm:$0xff] }
 0x10b   :  { %v601_v17 = vmax.f32 %v523_v22, 0.0  ;;  %v1196_v18 = vpop.f32.mrb[22].mxu0  ;;  %1253 = vmatprep.subr.bf16.mxu1 %v1252_v14  ;;  %v637_v14 = vld [vmem:[%s1858_s3 + $0xc0] sm:$0xff]  ;;  %v640_v22 = vld [vmem:[%s1858_s3 + $0xd8] sm:$0xff] }
 0x10c   :  { %v538_v26 = vadd.f32 %v1196_v18, %v1676_v34  ;;  %v532_v27 = vpop.f32.mrb[23].mxu0  ;;  %1255 = vmatpush3.bf16.msra.mxu1 %v1692_v63  ;;  %v641_v18 = vld [vmem:[%s1858_s3 + $0xe0] sm:$0xff] }
 0x10d   :  { %v1256_v19 = vpack.c.bf16 %v602_v15, %v601_v17  ;;  %v533_v20 = vadd.f32 %v532_v27, %v1678_v35  ;;  %v639_v15 = vld [vmem:[%s1858_s3 + $0xd0] sm:$0xff]  ;;  %v642_v17 = vld [vmem:[%s1858_s3 + $0xe8] sm:$0xff] }
 0x10e   :  { %v604_v21 = vmax.f32 %v538_v26, 0.0  ;;  %v644_v26 = vld [vmem:[%s1858_s3 + $0xf8] sm:$0xff]  ;;  %v643_v27 = vld [vmem:[%s1858_s3 + $0xf0] sm:$0xff] }
 0x10f   :  { %v603_v30 = vmax.f32 %v533_v20, 0.0  ;;  %v1199_v23 = vpop.f32.mrb[24].mxu0  ;;  %1257 = vmatprep.subr.bf16.mxu1 %v1256_v19  ;;  %v1336_v19 = vmov 0.0|0.0   ;;  %v1338_v20 = vmov 0.0  }
 0x110   :  { %v548_v56 = vadd.f32 %v1199_v23, %v1680_v38  ;;  %v542_v29 = vpop.f32.mrb[25].mxu0  ;;  %1259 = vmatpush3.bf16.msra.mxu1 %v1696_v7  ;;  %1280 = vmatprep.subr.bf16.mxu0 %v1336_v19 }
 0x111   :  { %v1260_v31 = vpack.c.bf16 %v604_v21, %v603_v30  ;;  %v543_v33 = vadd.f32 %v542_v29, %v1682_v39  ;;  %1241 = vmatprep.mubr.msk.f32.mxu0 %vm1337_vm2, %v1338_v20  ;;  %v664_v29 = vpop.permute.xlu0 %663 }
 0x112   :  { %v606_v36 = vmax.f32 %v548_v56, 0.0 }
 0x113   :  { %v605_v34 = vmax.f32 %v543_v33, 0.0  ;;  %v1202_v37 = vpop.f32.mrb[26].mxu0  ;;  %1261 = vmatprep.subr.bf16.mxu1 %v1260_v31 }
 0x114   :  { %v558_v63 = vadd.f32 %v1202_v37, %v1684_v42  ;;  %v552_v40 = vpop.f32.mrb[27].mxu0  ;;  %1263 = vmatpush3.bf16.msra.mxu1 %v1698_v16 }
 0x115   :  { %v1264_v35 = vpack.c.bf16 %v606_v36, %v605_v34  ;;  %v553_v44 = vadd.f32 %v552_v40, %v1686_v43  ;;  %v669_v34 = vpop.permute.xlu1 %668 }
 0x116   :  { %v608_v41 = vmax.f32 %v558_v63, 0.0 }
 0x117   :  { %v607_v38 = vmax.f32 %v553_v44, 0.0  ;;  %v1205_v46 = vpop.f32.mrb[28].mxu0  ;;  %1265 = vmatprep.subr.bf16.mxu1 %v1264_v35 }
 0x118   :  { %v568_v7 = vadd.f32 %v1205_v46, %v1690_v62  ;;  %v562_v47 = vpop.f32.mrb[29].mxu0  ;;  %1267 = vmatpush3.bf16.msra.mxu1 %v1702_v28 }
 0x119   :  { %v1268_v39 = vpack.c.bf16 %v608_v41, %v607_v38  ;;  %v563_v48 = vadd.f32 %v562_v47, %v1694_v1  ;;  %v613_v1 = vld [vmem:[%s1858_s3] sm:$0xff] }
 0x11a   :  { %v610_v49 = vmax.f32 %v568_v7, 0.0  ;;  %v674_v7 = vpop.permute.xlu0 %673 }
 0x11b   :  { %v609_v42 = vmax.f32 %v563_v48, 0.0  ;;  %v1208_v50 = vpop.f32.mrb[30].mxu0  ;;  %1269 = vmatprep.subr.bf16.mxu1 %v1268_v39 }
 0x11c   :  { %v578_v16 = vadd.f32 %v1208_v50, %v1700_v24  ;;  %v572_v51 = vpop.f32.mrb[31].mxu0  ;;  %1271 = vmatpush3.bf16.msra.mxu1 %v1706_v45  ;;  %v616_v24 = vld [vmem:[%s1858_s3 + $0x18] sm:$0xff]  ;;  %v618_v45 = vld [vmem:[%s1858_s3 + $0x28] sm:$0xff] }
 0x11d   :  { %v1272_v43 = vpack.c.bf16 %v610_v49, %v609_v42  ;;  %v573_v53 = vadd.f32 %v572_v51, %v1704_v32  ;;  %v615_v32 = vld [vmem:[%s1858_s3 + $0x10] sm:$0xff]  ;;  %v679_v49 = vpop.permute.xlu1 %678 }
 0x11e   :  { %v612_v52 = vmax.f32 %v578_v16, 0.0 }
 0x11f   :  { %v611_v62 = vmax.f32 %v573_v53, 0.0  ;;  %1273 = vmatprep.subr.bf16.mxu1 %v1272_v43 }
 0x120   :  { %1275 = vmatpush3.bf16.msra.mxu1 %v1708_v54  ;;  %v617_v54 = vld [vmem:[%s1858_s3 + $0x20] sm:$0xff] }
 0x121   :  { %v1276_v28 = vpack.c.bf16 %v612_v52, %v611_v62 }
 0x123   :  { %1277 = vmatprep.subr.bf16.mxu1 %v1276_v28  ;;  %v684_v28 = vpop.permute.xlu0 %683 }
 0x124   :  { %1279 = vmatpush3.bf16.msra.mxu1 %v1711_v61  ;;  %v623_v61 = vld [vmem:[%s1858_s3 + $0x50] sm:$0xff] }
 0x127   :  { %806 = vmatmul.mubr.f32.vlgmr.msra.gmra.mrb[0].mxu1 %v613_v1 }
 0x128   :  { %810 = vmatprep.mubr.f32.mxu1 %v616_v24 }
 0x12b   :  { %811 = vmatmul.mubr.f32.gmra.mrb[2].mxu1 %v615_v32 }
 0x12c   :  { %815 = vmatprep.mubr.f32.mxu1 %v618_v45  ;;  %v689_v45 = vpop.permute.xlu1 %688 }
 0x12f   :  { %816 = vmatmul.mubr.f32.gmra.mrb[4].mxu1 %v617_v54 }
 0x130   :  { %820 = vmatprep.mubr.f32.mxu1 %v620_v55 }
 0x133   :  { %821 = vmatmul.mubr.f32.gmra.mrb[6].mxu1 %v619_v57 }
 0x134   :  { %825 = vmatprep.mubr.f32.mxu1 %v622_v58 }
 0x137   :  { %826 = vmatmul.mubr.f32.gmra.mrb[8].mxu1 %v621_v59 }
 0x138   :  { %830 = vmatprep.mubr.f32.mxu1 %v624_v60 }
 0x13b   :  { %831 = vmatmul.mubr.f32.gmra.mrb[10].mxu1 %v623_v61 }
 0x13c   :  { %835 = vmatprep.mubr.f32.mxu1 %v626_v0 }
 0x13f   :  { %836 = vmatmul.mubr.f32.gmra.mrb[12].mxu1 %v625_v2  ;;  %v694_v2 = vpop.permute.xlu0 %693 }
 0x140   :  { %840 = vmatprep.mubr.f32.mxu1 %v628_v3 }
 0x143   :  { %841 = vmatmul.mubr.f32.gmra.mrb[14].mxu1 %v627_v4 }
 0x144   :  { %845 = vmatprep.mubr.f32.mxu1 %v630_v5 }
 0x147   :  { %846 = vmatmul.mubr.f32.gmra.mrb[16].mxu1 %v629_v6  ;;  %v699_v6 = vpop.permute.xlu1 %698 }
 0x148   :  { %850 = vmatprep.mubr.f32.mxu1 %v632_v8 }
 0x14b   :  { %851 = vmatmul.mubr.f32.gmra.mrb[18].mxu1 %v631_v9 }
 0x14c   :  { %855 = vmatprep.mubr.f32.mxu1 %v634_v10 }
 0x14f   :  { %856 = vmatmul.mubr.f32.gmra.mrb[20].mxu1 %v633_v11 }
 0x150   :  { %860 = vmatprep.mubr.f32.mxu1 %v636_v12 }
 0x153   :  { %861 = vmatmul.mubr.f32.gmra.mrb[22].mxu1 %v635_v25 }
 0x154   :  { %865 = vmatprep.mubr.f32.mxu1 %v638_v13 }
 0x157   :  { %866 = vmatmul.mubr.f32.gmra.mrb[24].mxu1 %v637_v14 }
 0x158   :  { %870 = vmatprep.mubr.f32.mxu1 %v640_v22  ;;  %v704_v22 = vpop.permute.xlu0 %703 }
 0x15b   :  { %871 = vmatmul.mubr.f32.gmra.mrb[26].mxu1 %v639_v15 }
 0x15c   :  { %875 = vmatprep.mubr.f32.mxu1 %v642_v17 }
 0x15f   :  { %876 = vmatmul.mubr.f32.gmra.mrb[28].mxu1 %v641_v18 }
 0x160   :  { %880 = vmatprep.mubr.f32.mxu1 %v644_v26  ;;  %v709_v26 = vpop.permute.xlu1 %708 }
 0x163   :  { %881 = vmatmul.mubr.f32.gmra.mrb[30].mxu1 %v643_v27 }
 0x1fa   :  { %v1090_v21 = vpop.f32.mrb[0].mxu1 }
 0x1fb   :  { %v1091_v30 = vpop.f32.mrb[1].mxu1 }
 0x1fc   :  { %v1092_v23 = vadd.f32 %v1091_v30, %v1090_v21 }
 0x1fe   :  { %v1093_v56 = vpop.f32.mrb[2].mxu1  ;;  %v808_v33 = vadd.f32 %v1092_v23, %v664_v29 }
 0x1ff   :  { %v1094_v31 = vpop.f32.mrb[3].mxu1 }
 0x200   :  { %v1095_v36 = vadd.f32 %v1094_v31, %v1093_v56  ;;  %v886_v35 = vmax.f32 %v808_v33, 0.0  ;;  %v714_v33 = vpop.permute.xlu0 %713 }
 0x202   :  { %v813_v37 = vadd.f32 %v1095_v36, %v669_v34  ;;  %v1096_v63 = vpop.f32.mrb[4].mxu1 }
 0x203   :  { %v1097_v40 = vpop.f32.mrb[5].mxu1 }
 0x204   :  { %v887_v44 = vmax.f32 %v813_v37, 0.0  ;;  %v1098_v41 = vadd.f32 %v1097_v40, %v1096_v63  ;;  %v719_v63 = vpop.permute.xlu1 %718 }
 0x206   :  { %v1281_v38 = vpack.c.bf16 %v887_v44, %v886_v35  ;;  %v1099_v46 = vpop.f32.mrb[6].mxu1  ;;  %v818_v39 = vadd.f32 %v1098_v41, %v674_v7 }
 0x207   :  { %v1100_v47 = vpop.f32.mrb[7].mxu1 }
 0x208   :  { %v1101_v48 = vadd.f32 %v1100_v47, %v1099_v46  ;;  %1282 = vmatpush3.bf16.msra.mxu0 %v1281_v38  ;;  %v888_v51 = vmax.f32 %v818_v39, 0.0  ;;  %v724_v39 = vpop.permute.xlu0 %723 }
 0x209   :  { %1283 = vmatprep.subr.bf16.mxu0 %v1336_v19 }
 0x20a   :  { %v823_v42 = vadd.f32 %v1101_v48, %v679_v49  ;;  %v1102_v50 = vpop.f32.mrb[8].mxu1 }
 0x20b   :  { %v1103_v16 = vpop.f32.mrb[9].mxu1 }
 0x20c   :  { %v889_v43 = vmax.f32 %v823_v42, 0.0  ;;  %v1104_v53 = vadd.f32 %v1103_v16, %v1102_v50  ;;  %v729_v50 = vpop.permute.xlu1 %728 }
 0x20e   :  { %v1284_v52 = vpack.c.bf16 %v889_v43, %v888_v51  ;;  %v1105_v62 = vpop.f32.mrb[10].mxu1  ;;  %v828_v24 = vadd.f32 %v1104_v53, %v684_v28 }
 0x20f   :  { %v1106_v1 = vpop.f32.mrb[11].mxu1 }
 0x210   :  { %v1107_v32 = vadd.f32 %v1106_v1, %v1105_v62  ;;  %1285 = vmatpush3.bf16.msra.mxu0 %v1284_v52  ;;  %v890_v58 = vmax.f32 %v828_v24, 0.0  ;;  %v734_v24 = vpop.permute.xlu0 %733 }
 0x211   :  { %1286 = vmatprep.subr.bf16.mxu0 %v1336_v19 }
 0x212   :  { %v833_v54 = vadd.f32 %v1107_v32, %v689_v45  ;;  %v1108_v55 = vpop.f32.mrb[12].mxu1 }
 0x213   :  { %v1109_v57 = vpop.f32.mrb[13].mxu1 }
 0x214   :  { %v891_v59 = vmax.f32 %v833_v54, 0.0  ;;  %v1110_v60 = vadd.f32 %v1109_v57, %v1108_v55  ;;  %v739_v55 = vpop.permute.xlu1 %738 }
 0x216   :  { %v1287_v61 = vpack.c.bf16 %v891_v59, %v890_v58  ;;  %v1111_v0 = vpop.f32.mrb[14].mxu1  ;;  %v838_v4 = vadd.f32 %v1110_v60, %v694_v2 }
 0x217   :  { %v1112_v3 = vpop.f32.mrb[15].mxu1 }
 0x218   :  { %v1113_v5 = vadd.f32 %v1112_v3, %v1111_v0  ;;  %1288 = vmatpush3.bf16.msra.mxu0 %v1287_v61  ;;  %v892_v11 = vmax.f32 %v838_v4, 0.0  ;;  %v902_v61 = vld [vmem:[%s1860_s5] sm:$0x1]  ;;  %v904_v0 = vstv %s1861_s6 }
 0x219   :  { %1289 = vmatprep.subr.bf16.mxu0 %v1336_v19 }
 0x21a   :  { %v843_v8 = vadd.f32 %v1113_v5, %v699_v6  ;;  %v1114_v9 = vpop.f32.mrb[16].mxu1 }
 0x21b   :  { %v1115_v10 = vpop.f32.mrb[17].mxu1 }
 0x21c   :  { %v893_v12 = vmax.f32 %v843_v8, 0.0  ;;  %v1116_v25 = vadd.f32 %v1115_v10, %v1114_v9 }
 0x21e   :  { %v1290_v13 = vpack.c.bf16 %v893_v12, %v892_v11  ;;  %v1117_v14 = vpop.f32.mrb[18].mxu1  ;;  %v848_v17 = vadd.f32 %v1116_v25, %v704_v22 }
 0x21f   :  { %v1118_v15 = vpop.f32.mrb[19].mxu1 }
 0x220   :  { %v1119_v18 = vadd.f32 %v1118_v15, %v1117_v14  ;;  %1291 = vmatpush3.bf16.msra.mxu0 %v1290_v13  ;;  %v894_v30 = vmax.f32 %v848_v17, 0.0 }
 0x221   :  { %1292 = vmatprep.subr.bf16.mxu0 %v1336_v19 }
 0x222   :  { %v853_v27 = vadd.f32 %v1119_v18, %v709_v26  ;;  %v1120_v20 = vpop.f32.mrb[20].mxu1 }
 0x223   :  { %v1121_v21 = vpop.f32.mrb[21].mxu1 }
 0x224   :  { %v895_v23 = vmax.f32 %v853_v27, 0.0  ;;  %v1122_v56 = vadd.f32 %v1121_v21, %v1120_v20 }
 0x226   :  { %v1293_v29 = vpack.c.bf16 %v895_v23, %v894_v30  ;;  %v1123_v31 = vpop.f32.mrb[22].mxu1  ;;  %v858_v34 = vadd.f32 %v1122_v56, %v714_v33 }
 0x227   :  { %v1124_v36 = vpop.f32.mrb[23].mxu1 }
 0x228   :  { %v1125_v37 = vadd.f32 %v1124_v36, %v1123_v31  ;;  %1294 = vmatpush3.bf16.msra.mxu0 %v1293_v29  ;;  %v896_v41 = vmax.f32 %v858_v34, 0.0 }
 0x229   :  { %1295 = vmatprep.subr.bf16.mxu0 %v1336_v19 }
 0x22a   :  { %v863_v40 = vadd.f32 %v1125_v37, %v719_v63  ;;  %v1126_v35 = vpop.f32.mrb[24].mxu1 }
 0x22b   :  { %v1127_v44 = vpop.f32.mrb[25].mxu1 }
 0x22c   :  { %v897_v38 = vmax.f32 %v863_v40, 0.0  ;;  %v1128_v46 = vadd.f32 %v1127_v44, %v1126_v35 }
 0x22e   :  { %v1296_v7 = vpack.c.bf16 %v897_v38, %v896_v41  ;;  %v1129_v47 = vpop.f32.mrb[26].mxu1  ;;  %v868_v49 = vadd.f32 %v1128_v46, %v724_v39 }
 0x22f   :  { %v1130_v48 = vpop.f32.mrb[27].mxu1 }
 0x230   :  { %v1131_v42 = vadd.f32 %v1130_v48, %v1129_v47  ;;  %1297 = vmatpush3.bf16.msra.mxu0 %v1296_v7  ;;  %v898_v53 = vmax.f32 %v868_v49, 0.0 }
 0x231   :  { %1298 = vmatprep.subr.bf16.mxu0 %v1336_v19 }
 0x232   :  { %v873_v16 = vadd.f32 %v1131_v42, %v729_v50  ;;  %v1132_v51 = vpop.f32.mrb[28].mxu1 }
 0x233   :  { %v1133_v43 = vpop.f32.mrb[29].mxu1 }
 0x234   :  { %v899_v52 = vmax.f32 %v873_v16, 0.0  ;;  %v1134_v62 = vadd.f32 %v1133_v43, %v1132_v51 }
 0x236   :  { %v1299_v28 = vpack.c.bf16 %v899_v52, %v898_v53  ;;  %v1135_v1 = vpop.f32.mrb[30].mxu1  ;;  %v878_v45 = vadd.f32 %v1134_v62, %v734_v24 }
 0x237   :  { %v1136_v32 = vpop.f32.mrb[31].mxu1 }
 0x238   :  { %v1137_v54 = vadd.f32 %v1136_v32, %v1135_v1  ;;  %1300 = vmatpush3.bf16.msra.mxu0 %v1299_v28  ;;  %v900_v58 = vmax.f32 %v878_v45, 0.0 }
 0x239   :  { %1301 = vmatprep.subr.bf16.mxu0 %v1336_v19 }
 0x23a   :  { %v883_v57 = vadd.f32 %v1137_v54, %v739_v55 }
 0x23c   :  { %v901_v59 = vmax.f32 %v883_v57, 0.0 }
 0x23e   :  { %v1302_v60 = vpack.c.bf16 %v901_v59, %v900_v58 }
 0x240   :  { %1303 = vmatpush3.bf16.msra.mxu0 %v1302_v60 }
 0x243   :  { %1242 = vmatmul.mubr.f32.vlgmr.msra.gmra.mrb[32].mxu0 %v902_v61 }
 0x316   :  { %v971_v2 = vpop.f32.mrb[32].mxu0 }
 0x317   :  { %v972_v3 = vadd.f32 %v971_v2, %v904_v0  ;;  %v1243_v4 = vpop.f32.mrb[33].mxu0 }
 0x319   :  { %975 = vst [vmem:[#allocation3] sm:$0x1] %v972_v3 }
 0x31a   :  { %1322 = shalt.err (!%p1319_p4)
}
 0x31b   :  { %s1323_s12 = scalar_lea.hbm %s1862_s7, 16 }
 0x31c   :  { %p1324_p5 = scmp.ne.s32.totalorder %s1862_s7, %s1323_s12  ;;  %p1327_p6 = scmp.lt.u32.totalorder %s1323_s12, %s1862_s7 }
 0x31e   :  { %p1329_p7 = pnand %p1327_p6, %p1324_p5 }
 0x320   :  { %1332 = shalt.err (!%p1329_p7)
}
 0x321   :  { %985 = dma.vmem_to_hbm [thread:$0]  %s983_s8, 16, %s1862_s7, [#allocation4]  }
 0x322   :  { %1333 = dma.done.wait [#allocation4], 16  }
 0x323   :  { %1334 = vsyncadd [#allocation4], 4294967280 }
 0x324   :  { %989 = vsyncpa [#allocation4], 1 }

</bundles_post_ra>
